<compile_context>
chip_gen: v6e
topology: v6e:2x2x1
jax: 0.10.0
libtpu: 0.0.40
codegen_flags: <defaults>
</compile_context>

<pallas_src>
import jax
import jax.numpy as jnp
from jax.experimental import pallas as pl
from jax.experimental.pallas import tpu as pltpu

INPUT_SIZE = 8        # F, T1, CA1, F1, Fc1, Tc1, Time, V  -> 8 features
HIDDEN_NODES = 128
HIDDEN_LAYERS = 3
OUTPUT_SIZE = 3

# Conservative across generations: per-step live intermediates are
# 3 x [TILE_B, 128] f32 ~= 1.5 MiB at TILE_B=1024, plus ~0.2 MiB of weights
# and double-buffered x/out tiles -> comfortably under v5e's 16 MiB scoped
# VMEM and v7x's 64 MiB total.
MAX_TILE_B = 1024


def _round_up(n, m):
    return ((n + m - 1) // m) * m


def _pinn_mlp_kernel(x_ref,
                     w1_ref, b1_ref,
                     w2_ref, b2_ref,
                     w3_ref, b3_ref,
                     w4_ref, b4_ref,
                     o_ref):
    """Fused MLP forward: tanh(tanh(tanh(x W1+b1) W2+b2) W3+b3) W4 + b4."""
    x = x_ref[...]                                            # [TILE_B, in]

    h = jnp.dot(x, w1_ref[...], preferred_element_type=jnp.float32)
    h = jnp.tanh(h + b1_ref[...])                             # [TILE_B, H]

    h = jnp.dot(h, w2_ref[...], preferred_element_type=jnp.float32)
    h = jnp.tanh(h + b2_ref[...])                             # [TILE_B, H]

    h = jnp.dot(h, w3_ref[...], preferred_element_type=jnp.float32)
    h = jnp.tanh(h + b3_ref[...])                             # [TILE_B, H]

    out = jnp.dot(h, w4_ref[...], preferred_element_type=jnp.float32)
    o_ref[...] = (out + b4_ref[...]).astype(o_ref.dtype)      # [TILE_B, out]


def pinn_forward(x, params, tile_b=None):
    """Run the PINNModel forward pass via a batch-tiled Pallas call.

    x: [B, INPUT_SIZE] float32
    params: dict with w1..w4 ([in, out]) and b1..b4 ([1, out]).
    tile_b: optional batch-tile override (rounded up to a multiple of 8).
    """
    B = x.shape[0]
    w1, b1 = params["w1"], params["b1"]
    w2, b2 = params["w2"], params["b2"]
    w3, b3 = params["w3"], params["b3"]
    w4, b4 = params["w4"], params["b4"]

    if tile_b is None:
        tile_b = min(MAX_TILE_B, _round_up(B, 8))
    tile_b = _round_up(tile_b, 8)

    # Pad the batch so the tile divides it exactly (padded rows compute
    # independently on zeros and are sliced off below).
    B_pad = _round_up(B, tile_b)
    if B_pad != B:
        x = jnp.pad(x, ((0, B_pad - B), (0, 0)))
    num_tiles = B_pad // tile_b

    # Weights / biases: full-array blocks, constant index_map -> stay
    # VMEM-resident across grid steps.
    const = lambda arr: pl.BlockSpec(arr.shape, lambda i: (0, 0))

    flops = 2 * B_pad * (INPUT_SIZE * HIDDEN_NODES
                         + (HIDDEN_LAYERS - 1) * HIDDEN_NODES * HIDDEN_NODES
                         + HIDDEN_NODES * OUTPUT_SIZE)
    transcendentals = HIDDEN_LAYERS * B_pad * HIDDEN_NODES
    param_bytes = sum(int(p.size) * 4 for p in (w1, b1, w2, b2, w3, b3, w4, b4))
    bytes_accessed = B_pad * (INPUT_SIZE + OUTPUT_SIZE) * 4 + param_bytes

    out = pl.pallas_call(
        _pinn_mlp_kernel,
        out_shape=jax.ShapeDtypeStruct((B_pad, OUTPUT_SIZE), jnp.float32),
        grid=(num_tiles,),
        in_specs=[
            pl.BlockSpec((tile_b, INPUT_SIZE), lambda i: (i, 0)),
            const(w1), const(b1),
            const(w2), const(b2),
            const(w3), const(b3),
            const(w4), const(b4),
        ],
        out_specs=pl.BlockSpec((tile_b, OUTPUT_SIZE), lambda i: (i, 0)),
        compiler_params=pltpu.CompilerParams(
            dimension_semantics=("parallel",)),
        cost_estimate=pl.CostEstimate(
            flops=flops,
            transcendentals=transcendentals,
            bytes_accessed=bytes_accessed),
    )(x, w1, b1, w2, b2, w3, b3, w4, b4)

    return out[:B]


def init_params(key):
    """Deterministic init matching the nn.Linear shapes of PINNModel.

    PyTorch default init is U(-1/sqrt(fan_in), 1/sqrt(fan_in)); we mimic it.
    Weights stored [in, out] so the kernel does x @ W + b.
    """
    dims = [INPUT_SIZE] + [HIDDEN_NODES] * HIDDEN_LAYERS + [OUTPUT_SIZE]
    params = {}
    for i in range(len(dims) - 1):
        fan_in, fan_out = dims[i], dims[i + 1]
        key, kw, kb = jax.random.split(key, 3)
        bound = 1.0 / (fan_in ** 0.5)
        params[f"w{i + 1}"] = jax.random.uniform(
            kw, (fan_in, fan_out), jnp.float32, -bound, bound)
        params[f"b{i + 1}"] = jax.random.uniform(
            kb, (1, fan_out), jnp.float32, -bound, bound)
    return params


def pinn_forward_ref(x, params):
    """Pure-JAX reference for correctness checking."""
    h = jnp.tanh(x @ params["w1"] + params["b1"])
    h = jnp.tanh(h @ params["w2"] + params["b2"])
    h = jnp.tanh(h @ params["w3"] + params["b3"])
    return h @ params["w4"] + params["b4"]


if __name__ == "__main__":
    key = jax.random.PRNGKey(0)
    key, kx1, kx2 = jax.random.split(key, 3)
    params = init_params(key)

    # Small-batch check (single grid step).
    B1 = 8
    x1 = jax.random.normal(kx1, (B1, INPUT_SIZE), dtype=jnp.float32)
    out1 = jax.block_until_ready(pinn_forward(x1, params))
    ref1 = pinn_forward_ref(x1, params)
    assert out1.shape == (B1, OUTPUT_SIZE)
    assert jnp.allclose(out1, ref1, atol=1e-5, rtol=1e-5), "mismatch (B=8)"

    # Multi-tile + ragged-batch check (grid of 3 steps with padding).
    B2 = 300
    x2 = jax.random.normal(kx2, (B2, INPUT_SIZE), dtype=jnp.float32)
    out2 = jax.block_until_ready(pinn_forward(x2, params, tile_b=128))
    ref2 = pinn_forward_ref(x2, params)
    assert out2.shape == (B2, OUTPUT_SIZE)
    assert jnp.allclose(out2, ref2, atol=1e-5, rtol=1e-5), "mismatch (B=300)"

    print("KERNEL_OK")
</pallas_src>

<mosaic_0001>
module attributes {stable_mosaic.version = 11 : i64} {
  func.func @_pinn_mlp_kernel(%arg0: i32, %arg1: memref<8x8xf32, #tpu.memory_space<vmem>>, %arg2: memref<8x128xf32, #tpu.memory_space<vmem>>, %arg3: memref<1x128xf32, #tpu.memory_space<vmem>>, %arg4: memref<128x128xf32, #tpu.memory_space<vmem>>, %arg5: memref<1x128xf32, #tpu.memory_space<vmem>>, %arg6: memref<128x128xf32, #tpu.memory_space<vmem>>, %arg7: memref<1x128xf32, #tpu.memory_space<vmem>>, %arg8: memref<128x3xf32, #tpu.memory_space<vmem>>, %arg9: memref<1x3xf32, #tpu.memory_space<vmem>>, %arg10: memref<8x3xf32, #tpu.memory_space<vmem>>) attributes {dimension_semantics = [#tpu.dimension_semantics<parallel>], iteration_bounds = array<i64: 1>, scalar_prefetch = 0 : i64, scratch_operands = 0 : i64, tpu.core_type = #tpu.core_type<tc>, window_params = [{transform_indices = @transform_0, window_bounds = array<i64: 8, 8>}, {pipeline_mode = #tpu.pipeline_mode<synchronous>, transform_indices = @transform_1, window_bounds = array<i64: 8, 128>}, {pipeline_mode = #tpu.pipeline_mode<synchronous>, transform_indices = @transform_2, window_bounds = array<i64: 1, 128>}, {pipeline_mode = #tpu.pipeline_mode<synchronous>, transform_indices = @transform_3, window_bounds = array<i64: 128, 128>}, {pipeline_mode = #tpu.pipeline_mode<synchronous>, transform_indices = @transform_4, window_bounds = array<i64: 1, 128>}, {pipeline_mode = #tpu.pipeline_mode<synchronous>, transform_indices = @transform_5, window_bounds = array<i64: 128, 128>}, {pipeline_mode = #tpu.pipeline_mode<synchronous>, transform_indices = @transform_6, window_bounds = array<i64: 1, 128>}, {pipeline_mode = #tpu.pipeline_mode<synchronous>, transform_indices = @transform_7, window_bounds = array<i64: 128, 3>}, {pipeline_mode = #tpu.pipeline_mode<synchronous>, transform_indices = @transform_8, window_bounds = array<i64: 1, 3>}, {transform_indices = @transform_9, window_bounds = array<i64: 8, 3>}]} {
    %c0 = arith.constant 0 : index
    %c0_0 = arith.constant 0 : index
    %0 = vector.load %arg1[%c0, %c0_0] : memref<8x8xf32, #tpu.memory_space<vmem>>, vector<8x8xf32>
    %c0_1 = arith.constant 0 : index
    %c0_2 = arith.constant 0 : index
    %1 = vector.load %arg2[%c0_1, %c0_2] : memref<8x128xf32, #tpu.memory_space<vmem>>, vector<8x128xf32>
    %cst = arith.constant dense<0.000000e+00> : vector<8x128xf32>
    %2 = tpu.matmul %0, %1, %cst {dimension_numbers = #tpu.dot_dimension_numbers<[1], [0], [0], [1], [0, 0, 1, 1], [], []>} : vector<8x8xf32>, vector<8x128xf32>, vector<8x128xf32> -> vector<8x128xf32>
    %c0_3 = arith.constant 0 : index
    %c0_4 = arith.constant 0 : index
    %3 = vector.load %arg3[%c0_3, %c0_4] : memref<1x128xf32, #tpu.memory_space<vmem>>, vector<1x128xf32>
    %4 = vector.broadcast %3 : vector<1x128xf32> to vector<8x128xf32>
    %5 = arith.addf %2, %4 : vector<8x128xf32>
    %6 = math.tanh %5 : vector<8x128xf32>
    %c0_5 = arith.constant 0 : index
    %c0_6 = arith.constant 0 : index
    %7 = vector.load %arg4[%c0_5, %c0_6] : memref<128x128xf32, #tpu.memory_space<vmem>>, vector<128x128xf32>
    %cst_7 = arith.constant dense<0.000000e+00> : vector<8x128xf32>
    %8 = tpu.matmul %6, %7, %cst_7 {dimension_numbers = #tpu.dot_dimension_numbers<[1], [0], [0], [1], [0, 0, 1, 1], [], []>} : vector<8x128xf32>, vector<128x128xf32>, vector<8x128xf32> -> vector<8x128xf32>
    %c0_8 = arith.constant 0 : index
    %c0_9 = arith.constant 0 : index
    %9 = vector.load %arg5[%c0_8, %c0_9] : memref<1x128xf32, #tpu.memory_space<vmem>>, vector<1x128xf32>
    %10 = vector.broadcast %9 : vector<1x128xf32> to vector<8x128xf32>
    %11 = arith.addf %8, %10 : vector<8x128xf32>
    %12 = math.tanh %11 : vector<8x128xf32>
    %c0_10 = arith.constant 0 : index
    %c0_11 = arith.constant 0 : index
    %13 = vector.load %arg6[%c0_10, %c0_11] : memref<128x128xf32, #tpu.memory_space<vmem>>, vector<128x128xf32>
    %cst_12 = arith.constant dense<0.000000e+00> : vector<8x128xf32>
    %14 = tpu.matmul %12, %13, %cst_12 {dimension_numbers = #tpu.dot_dimension_numbers<[1], [0], [0], [1], [0, 0, 1, 1], [], []>} : vector<8x128xf32>, vector<128x128xf32>, vector<8x128xf32> -> vector<8x128xf32>
    %c0_13 = arith.constant 0 : index
    %c0_14 = arith.constant 0 : index
    %15 = vector.load %arg7[%c0_13, %c0_14] : memref<1x128xf32, #tpu.memory_space<vmem>>, vector<1x128xf32>
    %16 = vector.broadcast %15 : vector<1x128xf32> to vector<8x128xf32>
    %17 = arith.addf %14, %16 : vector<8x128xf32>
    %18 = math.tanh %17 : vector<8x128xf32>
    %c0_15 = arith.constant 0 : index
    %c0_16 = arith.constant 0 : index
    %19 = vector.load %arg8[%c0_15, %c0_16] : memref<128x3xf32, #tpu.memory_space<vmem>>, vector<128x3xf32>
    %cst_17 = arith.constant dense<0.000000e+00> : vector<8x3xf32>
    %20 = tpu.matmul %18, %19, %cst_17 {dimension_numbers = #tpu.dot_dimension_numbers<[1], [0], [0], [1], [0, 0, 1, 1], [], []>} : vector<8x128xf32>, vector<128x3xf32>, vector<8x3xf32> -> vector<8x3xf32>
    %c0_18 = arith.constant 0 : index
    %c0_19 = arith.constant 0 : index
    %21 = vector.load %arg9[%c0_18, %c0_19] : memref<1x3xf32, #tpu.memory_space<vmem>>, vector<1x3xf32>
    %22 = vector.broadcast %21 : vector<1x3xf32> to vector<8x3xf32>
    %23 = arith.addf %20, %22 : vector<8x3xf32>
    %c0_20 = arith.constant 0 : index
    %c0_21 = arith.constant 0 : index
    %24 = vector.load %arg10[%c0_20, %c0_21] : memref<8x3xf32, #tpu.memory_space<vmem>>, vector<8x3xf32>
    tpu.vector_store %arg10[%c0_20, %c0_21], %23 {strides = array<i32>} : memref<8x3xf32, #tpu.memory_space<vmem>>, vector<8x3xf32>,
    return
  }
  func.func @transform_0(%arg0: i32) -> (i32, i32) {
    %c0_i32 = arith.constant 0 : i32
    %c0_i32_0 = arith.constant 0 : i32
    return %arg0, %c0_i32 : i32, i32
  }
  func.func @transform_1(%arg0: i32) -> (i32, i32) {
    %c0_i32 = arith.constant 0 : i32
    %c0_i32_0 = arith.constant 0 : i32
    %c0_i32_1 = arith.constant 0 : i32
    return %c0_i32, %c0_i32_0 : i32, i32
  }
  func.func @transform_2(%arg0: i32) -> (i32, i32) {
    %c0_i32 = arith.constant 0 : i32
    %c0_i32_0 = arith.constant 0 : i32
    %c0_i32_1 = arith.constant 0 : i32
    return %c0_i32, %c0_i32_0 : i32, i32
  }
  func.func @transform_3(%arg0: i32) -> (i32, i32) {
    %c0_i32 = arith.constant 0 : i32
    %c0_i32_0 = arith.constant 0 : i32
    %c0_i32_1 = arith.constant 0 : i32
    return %c0_i32, %c0_i32_0 : i32, i32
  }
  func.func @transform_4(%arg0: i32) -> (i32, i32) {
    %c0_i32 = arith.constant 0 : i32
    %c0_i32_0 = arith.constant 0 : i32
    %c0_i32_1 = arith.constant 0 : i32
    return %c0_i32, %c0_i32_0 : i32, i32
  }
  func.func @transform_5(%arg0: i32) -> (i32, i32) {
    %c0_i32 = arith.constant 0 : i32
    %c0_i32_0 = arith.constant 0 : i32
    %c0_i32_1 = arith.constant 0 : i32
    return %c0_i32, %c0_i32_0 : i32, i32
  }
  func.func @transform_6(%arg0: i32) -> (i32, i32) {
    %c0_i32 = arith.constant 0 : i32
    %c0_i32_0 = arith.constant 0 : i32
    %c0_i32_1 = arith.constant 0 : i32
    return %c0_i32, %c0_i32_0 : i32, i32
  }
  func.func @transform_7(%arg0: i32) -> (i32, i32) {
    %c0_i32 = arith.constant 0 : i32
    %c0_i32_0 = arith.constant 0 : i32
    %c0_i32_1 = arith.constant 0 : i32
    return %c0_i32, %c0_i32_0 : i32, i32
  }
  func.func @transform_8(%arg0: i32) -> (i32, i32) {
    %c0_i32 = arith.constant 0 : i32
    %c0_i32_0 = arith.constant 0 : i32
    %c0_i32_1 = arith.constant 0 : i32
    return %c0_i32, %c0_i32_0 : i32, i32
  }
  func.func @transform_9(%arg0: i32) -> (i32, i32) {
    %c0_i32 = arith.constant 0 : i32
    %c0_i32_0 = arith.constant 0 : i32
    return %arg0, %c0_i32 : i32, i32
  }
}

</mosaic_0001>

<bundles_post_ra>
// kernel: tpu_custom_call.1
= control target key start
LH: loop header
LB: loop body
LE: loop exit
PB: predicated region body
PF: predicated region fallthrough
CT: control target
= control target key end

     0   :  { %14 = vsyncpa [#allocation3], 0  ;;  %s921_s0 = inlined_call_operand.vmem [shape: f32[8,8], index: 0, kind: input, shape index: {}]   ;;  %s922_s1 = inlined_call_operand.hbm [shape: f32[8,128], index: 1, kind: input, shape index: {}]   ;;  %s923_s2 = inlined_call_operand.vmem [shape: f32[1,128], index: 2, kind: input, shape index: {}]   ;;  %s924_s3 = inlined_call_operand.vmem [shape: f32[128,128], index: 3, kind: input, shape index: {}]   ;;  %s925_s4 = inlined_call_operand.hbm [shape: f32[1,128], index: 4, kind: input, shape index: {}]   ;;  %s926_s5 = inlined_call_operand.hbm [shape: f32[128,128], index: 5, kind: input, shape index: {}]   ;;  %s927_s6 = inlined_call_operand.vmem [shape: f32[1,128], index: 6, kind: input, shape index: {}]   ;;  %s928_s7 = inlined_call_operand.vmem [shape: f32[128,3], index: 7, kind: input, shape index: {}]   ;;  %s929_s8 = inlined_call_operand.vmem [shape: f32[1,3], index: 8, kind: input, shape index: {}]   ;;  %s930_s9 = inlined_call_operand.vmem [shape: f32[8,3], index: 9, kind: output, shape index: {}]  }
   0x1   :  { %15 = vsyncpa [#allocation5], 0  ;;  %s687_s30 = smov [#allocation4]   ;;  %s688_s11 = smov [#allocation2]  }
   0x2   :  { %s38_s10 = sshll.u32 %s687_s30, 4  ;;  %s24_s12 = sshll.u32 %s688_s11, 4  ;;  %s39_s10 = int_to_ptr.vmem [resolvable:$true] %s38_s10  ;;  %s25_s12 = int_to_ptr.vmem [resolvable:$true] %s24_s12 }
   0x3   :  { %s631_s13 = scalar_lea.vmem %s39_s10, 16  ;;  %s635_s14 = scalar_lea.vmem %s39_s10, 32 }
   0x4   :  { %p632_p0 = scmp.ne.s32.totalorder %s39_s10, %s631_s13  ;;  %p636_p1 = scmp.lt.s32.totalorder %s39_s10, %s39_s10 }
   0x5   :  { %p637_p2 = scmp.lt.s32.totalorder %s635_s14, %s631_s13 }
   0x7   :  { %p638_p3 = por %p637_p2, %p636_p1 }
   0x9   :  { %p639_p4 = pnand %p638_p3, %p632_p0 }
   0xb   :  { %642 = shalt.err (!%p639_p4)
}
   0xc   :  { %41 = dma.hbm_to_vmem [thread:$0]  %s925_s4, 16, %s39_s10, [#allocation5]  }
   0xd   :  { %s651_s17 = scalar_lea.vmem %s25_s12, 128  ;;  %p656_p6 = scmp.lt.s32.totalorder %s25_s12, %s25_s12 }
   0xe   :  { %p652_p5 = scmp.ne.s32.totalorder %s25_s12, %s651_s17  ;;  %p657_p7 = scmp.lt.s32.totalorder %s651_s17, %s651_s17 }
  0x10   :  { %p658_p8 = por %p657_p7, %p656_p6 }
  0x12   :  { %p659_p9 = pnand %p658_p8, %p652_p5 }
  0x14   :  { %662 = shalt.err (!%p659_p9)
}
  0x15   :  { %27 = dma.hbm_to_vmem [thread:$0]  %s922_s1, 128, %s25_s12, [#allocation3]  }
  0x16   :  { %s689_s20 = smov [#allocation6]  }
  0x17   :  { %s47_s21 = sshll.u32 %s689_s20, 4  ;;  %s48_s21 = int_to_ptr.vmem [resolvable:$true] %s47_s21 }
  0x18   :  { %s671_s22 = scalar_lea.vmem %s48_s21, 2048  ;;  %p676_p11 = scmp.lt.s32.totalorder %s48_s21, %s48_s21 }
  0x19   :  { %p672_p10 = scmp.ne.s32.totalorder %s48_s21, %s671_s22  ;;  %p677_p12 = scmp.lt.s32.totalorder %s671_s22, %s671_s22 }
  0x1b   :  { %p678_p13 = por %p677_p12, %p676_p11 }
  0x1d   :  { %p679_p0 = pnand %p678_p13, %p672_p10 }
  0x1f   :  { %682 = shalt.err (!%p679_p0)
}
  0x20   :  { %s690_s4 = smov 128   ;;  %s691_s23 = smov 8  }
  0x21   :  { %53 = dma.hbm_to_vmem [thread:$0]  %s926_s5, 2048, %s48_s21, [#allocation5], %s690_s4, %s690_s4, %s691_s23  }
  0x22   :  { %683 = dma.done.wait [#allocation3], 128  }
  0x23   :  { %684 = vsyncadd [#allocation3], 4294967168 }
  0x24   :  { %685 = dma.done.wait [#allocation5], 2064  }
  0x25   :  { %686 = vsyncadd [#allocation5], 4294965232  ;;  %v692_v0 = vmov 0.0   ;;  %vm693_vm0 = vmmov 0   ;;  %vm78_vm1 = vcmask 64512   ;;  %v70_v1 = vld [vmem:[#allocation2] sm:$0xff] }
  0x26   :  { %500 = vmatprep.subr.mxu0 %v692_v0  ;;  %502 = vmatprep.mubr.msk.f32.mxu0 %vm693_vm0, %v692_v0  ;;  %v69_v2 = vld [vmem:[%s921_s0] sm:$0xff]  ;;  %v168_v3 = vld [vmem:[%s924_s3 + $0x78] sm:$0xff]  ;;  %v167_v4 = vld [vmem:[%s924_s3 + $0x70] sm:$0xff]  ;;  %vm434_vm2 = vcmask 23552  }
  0x27   :  { %505 = vmatprep.subr.mxu1 %v692_v0  ;;  %537 = vmatprep.mubr.msk.f32.mxu1 %vm693_vm0, %v692_v0  ;;  %v166_v5 = vld [vmem:[%s924_s3 + $0x68] sm:$0xff]  ;;  %v165_v6 = vld [vmem:[%s924_s3 + $0x60] sm:$0xff]  ;;  %v164_v7 = vld [vmem:[%s924_s3 + $0x58] sm:$0xff] }
  0x28   :  { %501 = vmatpush3.msra.mxu0 %v70_v1  ;;  %506 = vmatpush3.msra.mxu1 %v168_v3  ;;  %v163_v8 = vld [vmem:[%s924_s3 + $0x50] sm:$0xff]  ;;  %v162_v9 = vld [vmem:[%s924_s3 + $0x48] sm:$0xff]  ;;  %v161_v10 = vld [vmem:[%s924_s3 + $0x40] sm:$0xff] }
  0x29   :  { %503 = vmatmul.mubr.msk.f32.vlgmr.msra.gmra.mxu0 %vm78_vm1, %v69_v2  ;;  %507 = vmatprep.subr.mxu1 %v692_v0  ;;  %v160_v11 = vld [vmem:[%s924_s3 + $0x38] sm:$0xff]  ;;  %v159_v12 = vld [vmem:[%s924_s3 + $0x30] sm:$0xff]  ;;  %v158_v13 = vld [vmem:[%s924_s3 + $0x28] sm:$0xff] }
  0x2a   :  { %508 = vmatpush3.msra.mxu1 %v167_v4  ;;  %540 = vmatprep.subr.mxu0 %v692_v0  ;;  %v157_v14 = vld [vmem:[%s924_s3 + $0x20] sm:$0xff]  ;;  %v156_v15 = vld [vmem:[%s924_s3 + $0x18] sm:$0xff]  ;;  %v155_v16 = vld [vmem:[%s924_s3 + $0x10] sm:$0xff] }
  0x2b   :  { %509 = vmatprep.subr.mxu1 %v692_v0  ;;  %572 = vmatprep.mubr.msk.f32.mxu0 %vm693_vm0, %v692_v0  ;;  %v154_v17 = vld [vmem:[%s924_s3 + $0x8] sm:$0xff]  ;;  %v153_v18 = vld [vmem:[%s924_s3] sm:$0xff]  ;;  %v260_v21 = vld [vmem:[#allocation6 + $0x68] sm:$0xff] }
  0x2c   :  { %510 = vmatpush3.msra.mxu1 %v166_v5  ;;  %v262_v19 = vld [vmem:[#allocation6 + $0x78] sm:$0xff]  ;;  %v261_v20 = vld [vmem:[#allocation6 + $0x70] sm:$0xff]  ;;  %v259_v22 = vld [vmem:[#allocation6 + $0x60] sm:$0xff] }
  0x2d   :  { %511 = vmatprep.subr.mxu1 %v692_v0  ;;  %541 = vmatpush3.msra.mxu0 %v262_v19  ;;  %v258_v23 = vld [vmem:[#allocation6 + $0x58] sm:$0xff]  ;;  %v257_v24 = vld [vmem:[#allocation6 + $0x50] sm:$0xff]  ;;  %v256_v25 = vld [vmem:[#allocation6 + $0x48] sm:$0xff] }
  0x2e   :  { %512 = vmatpush3.msra.mxu1 %v165_v6  ;;  %542 = vmatprep.subr.mxu0 %v692_v0  ;;  %v442_v26 = vld [vmem:[%s923_s2] ss:$0 sm:$0xff]  ;;  %v255_v31 = vld [vmem:[#allocation6 + $0x40] sm:$0xff]  ;;  %v254_v32 = vld [vmem:[#allocation6 + $0x38] sm:$0xff] }
  0x2f   :  { %513 = vmatprep.subr.mxu1 %v692_v0  ;;  %543 = vmatpush3.msra.mxu0 %v261_v20  ;;  %v253_v33 = vld [vmem:[#allocation6 + $0x30] sm:$0xff]  ;;  %v252_v34 = vld [vmem:[#allocation6 + $0x28] sm:$0xff]  ;;  %v251_v35 = vld [vmem:[#allocation6 + $0x20] sm:$0xff] }
  0x30   :  { %514 = vmatpush3.msra.mxu1 %v164_v7  ;;  %544 = vmatprep.subr.mxu0 %v692_v0  ;;  %v250_v36 = vld [vmem:[#allocation6 + $0x18] sm:$0xff]  ;;  %v249_v37 = vld [vmem:[#allocation6 + $0x10] sm:$0xff]  ;;  %v248_v38 = vld [vmem:[#allocation6 + $0x8] sm:$0xff] }
  0x31   :  { %515 = vmatprep.subr.mxu1 %v692_v0  ;;  %545 = vmatpush3.msra.mxu0 %v260_v21  ;;  %v247_v39 = vld [vmem:[#allocation6] sm:$0xff]  ;;  %v356_v40 = vld [vmem:[%s928_s7 + $0x78] sm:$0xff]  ;;  %v353_v43 = vld [vmem:[%s928_s7 + $0x60] sm:$0xff] }
  0x32   :  { %516 = vmatpush3.msra.mxu1 %v163_v8  ;;  %546 = vmatprep.subr.mxu0 %v692_v0  ;;  %v355_v41 = vld [vmem:[%s928_s7 + $0x70] sm:$0xff]  ;;  %v354_v42 = vld [vmem:[%s928_s7 + $0x68] sm:$0xff]  ;;  %v352_v44 = vld [vmem:[%s928_s7 + $0x58] sm:$0xff] }
  0x33   :  { %517 = vmatprep.subr.mxu1 %v692_v0  ;;  %547 = vmatpush3.msra.mxu0 %v259_v22  ;;  %v351_v45 = vld [vmem:[%s928_s7 + $0x50] sm:$0xff]  ;;  %v350_v46 = vld [vmem:[%s928_s7 + $0x48] sm:$0xff]  ;;  %v349_v52 = vld [vmem:[%s928_s7 + $0x40] sm:$0xff] }
  0x34   :  { %518 = vmatpush3.msra.mxu1 %v162_v9  ;;  %548 = vmatprep.subr.mxu0 %v692_v0  ;;  %v444_v47 = vld [vmem:[#allocation4] ss:$0 sm:$0xff]  ;;  %v348_v53 = vld [vmem:[%s928_s7 + $0x38] sm:$0xff]  ;;  %v347_v54 = vld [vmem:[%s928_s7 + $0x30] sm:$0xff] }
  0x35   :  { %519 = vmatprep.subr.mxu1 %v692_v0  ;;  %549 = vmatpush3.msra.mxu0 %v258_v23  ;;  %v346_v55 = vld [vmem:[%s928_s7 + $0x28] sm:$0xff]  ;;  %v345_v56 = vld [vmem:[%s928_s7 + $0x20] sm:$0xff]  ;;  %v344_v57 = vld [vmem:[%s928_s7 + $0x18] sm:$0xff] }
  0x36   :  { %520 = vmatpush3.msra.mxu1 %v161_v10  ;;  %550 = vmatprep.subr.mxu0 %v692_v0  ;;  %v343_v58 = vld [vmem:[%s928_s7 + $0x10] sm:$0xff]  ;;  %v342_v59 = vld [vmem:[%s928_s7 + $0x8] sm:$0xff]  ;;  %v341_v60 = vld [vmem:[%s928_s7] sm:$0xff] }
  0x37   :  { %521 = vmatprep.subr.mxu1 %v692_v0  ;;  %551 = vmatpush3.msra.mxu0 %v257_v24  ;;  %v445_v61 = vld [vmem:[%s927_s6] ss:$0 sm:$0xff] }
  0x38   :  { %522 = vmatpush3.msra.mxu1 %v160_v11  ;;  %552 = vmatprep.subr.mxu0 %v692_v0  ;;  %v446_v3 = vld [vmem:[%s929_s8] ss:$0 sm:$0xff] }
  0x39   :  { %523 = vmatprep.subr.mxu1 %v692_v0  ;;  %553 = vmatpush3.msra.mxu0 %v256_v25 }
  0x3a   :  { %524 = vmatpush3.msra.mxu1 %v159_v12  ;;  %554 = vmatprep.subr.mxu0 %v692_v0 }
  0x3b   :  { %525 = vmatprep.subr.mxu1 %v692_v0  ;;  %555 = vmatpush3.msra.mxu0 %v255_v31 }
  0x3c   :  { %526 = vmatpush3.msra.mxu1 %v158_v13  ;;  %556 = vmatprep.subr.mxu0 %v692_v0 }
  0x3d   :  { %527 = vmatprep.subr.mxu1 %v692_v0  ;;  %557 = vmatpush3.msra.mxu0 %v254_v32 }
  0x3e   :  { %528 = vmatpush3.msra.mxu1 %v157_v14  ;;  %558 = vmatprep.subr.mxu0 %v692_v0 }
  0x3f   :  { %529 = vmatprep.subr.mxu1 %v692_v0  ;;  %559 = vmatpush3.msra.mxu0 %v253_v33 }
  0x40   :  { %530 = vmatpush3.msra.mxu1 %v156_v15  ;;  %560 = vmatprep.subr.mxu0 %v692_v0 }
  0x41   :  { %531 = vmatprep.subr.mxu1 %v692_v0  ;;  %561 = vmatpush3.msra.mxu0 %v252_v34 }
  0x42   :  { %532 = vmatpush3.msra.mxu1 %v155_v16  ;;  %562 = vmatprep.subr.mxu0 %v692_v0 }
  0x43   :  { %533 = vmatprep.subr.mxu1 %v692_v0  ;;  %563 = vmatpush3.msra.mxu0 %v251_v35 }
  0x44   :  { %534 = vmatpush3.msra.mxu1 %v154_v17  ;;  %564 = vmatprep.subr.mxu0 %v692_v0 }
  0x45   :  { %535 = vmatprep.subr.mxu1 %v692_v0  ;;  %565 = vmatpush3.msra.mxu0 %v250_v36 }
  0x46   :  { %536 = vmatpush3.msra.mxu1 %v153_v18  ;;  %566 = vmatprep.subr.mxu0 %v692_v0 }
  0x47   :  { %575 = vmatprep.subr.mxu1 %v692_v0  ;;  %567 = vmatpush3.msra.mxu0 %v249_v37 }
  0x48   :  { %568 = vmatprep.subr.mxu0 %v692_v0 }
  0x49   :  { %569 = vmatpush3.msra.mxu0 %v248_v38 }
  0x4a   :  { %570 = vmatprep.subr.mxu0 %v692_v0 }
  0x4b   :  { %571 = vmatpush3.msra.mxu0 %v247_v39 }
  0xe9   :  { %v148_v27 = vpop.f32.mrf.mxu0 }
  0xea   :  { %v149_v28 = vadd.f32 %v442_v26, %v148_v27 }
  0xeb   :  { %v504_v29 = vpop.f32.mrf.mxu0 }
  0xec   :  { %617 = vtanh.f32 %v149_v28 }
  0xf9   :  { %v618_v30 = vpop.eup %617 }
  0xfa   :  { %538 = vmatmul.mubr.f32.vlgmr.msra.gmra.mxu1 %v618_v30 }
  0xfb   :  { %607 = vmatprep.mubr.msk.f32.mxu1 %vm693_vm0, %v692_v0  ;;  %576 = vmatpush3.msra.mxu1 %v356_v40 }
  0xfc   :  { %577 = vmatprep.subr.mxu1 %v692_v0 }
  0xfd   :  { %578 = vmatpush3.msra.mxu1 %v355_v41 }
  0xfe   :  { %579 = vmatprep.subr.mxu1 %v692_v0 }
  0xff   :  { %580 = vmatpush3.msra.mxu1 %v354_v42 }
 0x100   :  { %581 = vmatprep.subr.mxu1 %v692_v0 }
 0x101   :  { %582 = vmatpush3.msra.mxu1 %v353_v43 }
 0x102   :  { %583 = vmatprep.subr.mxu1 %v692_v0 }
 0x103   :  { %584 = vmatpush3.msra.mxu1 %v352_v44 }
 0x104   :  { %585 = vmatprep.subr.mxu1 %v692_v0 }
 0x105   :  { %586 = vmatpush3.msra.mxu1 %v351_v45 }
 0x106   :  { %587 = vmatprep.subr.mxu1 %v692_v0 }
 0x107   :  { %588 = vmatpush3.msra.mxu1 %v350_v46 }
 0x108   :  { %589 = vmatprep.subr.mxu1 %v692_v0 }
 0x109   :  { %590 = vmatpush3.msra.mxu1 %v349_v52 }
 0x10a   :  { %591 = vmatprep.subr.mxu1 %v692_v0 }
 0x10b   :  { %592 = vmatpush3.msra.mxu1 %v348_v53 }
 0x10c   :  { %593 = vmatprep.subr.mxu1 %v692_v0 }
 0x10d   :  { %594 = vmatpush3.msra.mxu1 %v347_v54 }
 0x10e   :  { %595 = vmatprep.subr.mxu1 %v692_v0 }
 0x10f   :  { %596 = vmatpush3.msra.mxu1 %v346_v55 }
 0x110   :  { %597 = vmatprep.subr.mxu1 %v692_v0 }
 0x111   :  { %598 = vmatpush3.msra.mxu1 %v345_v56 }
 0x112   :  { %599 = vmatprep.subr.mxu1 %v692_v0 }
 0x113   :  { %600 = vmatpush3.msra.mxu1 %v344_v57 }
 0x114   :  { %601 = vmatprep.subr.mxu1 %v692_v0 }
 0x115   :  { %602 = vmatpush3.msra.mxu1 %v343_v58 }
 0x116   :  { %603 = vmatprep.subr.mxu1 %v692_v0 }
 0x117   :  { %604 = vmatpush3.msra.mxu1 %v342_v59 }
 0x118   :  { %605 = vmatprep.subr.mxu1 %v692_v0 }
 0x119   :  { %606 = vmatpush3.msra.mxu1 %v341_v60 }
 0x1ba   :  { %v242_v48 = vpop.f32.mrf.mxu1 }
 0x1bb   :  { %v243_v49 = vadd.f32 %v444_v47, %v242_v48 }
 0x1bc   :  { %v539_v50 = vpop.f32.mrf.mxu1 }
 0x1bd   :  { %619 = vtanh.f32 %v243_v49 }
 0x1ca   :  { %v620_v51 = vpop.eup %619 }
 0x1cb   :  { %573 = vmatmul.mubr.f32.vlgmr.msra.gmra.mxu0 %v620_v51 }
 0x28b   :  { %v336_v62 = vpop.f32.mrf.mxu0 }
 0x28c   :  { %v337_v63 = vadd.f32 %v445_v61, %v336_v62 }
 0x28d   :  { %v574_v1 = vpop.f32.mrf.mxu0 }
 0x28e   :  { %621 = vtanh.f32 %v337_v63 }
 0x29b   :  { %v622_v2 = vpop.eup %621 }
 0x29c   :  { %608 = vmatmul.mubr.f32.vlgmr.msra.gmra.mxu1 %v622_v2 }
 0x35c   :  { %v430_v4 = vpop.f32.mrf.mxu1 }
 0x35d   :  { %v431_v5 = vadd.f32 %v446_v3, %v430_v4 }
 0x35e   :  { %v609_v6 = vpop.f32.mrf.mxu1 }
 0x35f   :  { %435 = vst.msk [vmem:[%s930_s9] sm:$0xff] %vm434_vm2, %v431_v5 }
 0x360   :  { %440 = vsyncpa [#allocation3], 1 }
 0x361   :  { %441 = vsyncpa [#allocation5], 1 }

</bundles_post_ra>
